<compile_context>
chip_gen: v6e
topology: v6e:2x2x1
jax: 0.10.0
libtpu: 0.0.40
codegen_flags: <defaults>
</compile_context>

<pallas_src>
import functools

import jax
import jax.numpy as jnp
from jax.experimental import pallas as pl
from jax.experimental.pallas import tpu as pltpu

SIGMA_DATA = 0.5
EPS = 0.002
SD2 = SIGMA_DATA * SIGMA_DATA

D_PAD = 128        # lane-dense feature / output width
H_PAD = 128        # lane / MXU aligned hidden width
MAX_TILE_N = 512   # sweep 512-2048 on v5e/v6e; halve on v7x (64 MiB VMEM, 2 TC)


def _round_up(a, b):
    return (a + b - 1) // b * b


def _fwd_kernel(n_valid, d_feat, tile_n,
                h_ref, w1_ref, b1_ref, w2_ref, b2_ref,
                y_ref, d_ref, psum_ref):
    """One node tile: 2-layer MLP + consistency combine + partial column sum."""
    hin = h_ref[...]                                        # [tile_n, D_PAD] f32

    # --- conditioned model: MLP, bf16 MXU operands, f32 accumulation ---
    a1 = jnp.dot(hin.astype(jnp.bfloat16), w1_ref[...],
                 preferred_element_type=jnp.float32)
    a1 = jnp.maximum(a1 + b1_ref[...], 0.0)                 # f32 elementwise
    y = jnp.dot(a1.astype(jnp.bfloat16), w2_ref[...],
                preferred_element_type=jnp.float32) + b2_ref[...]
    y_ref[...] = y

    # --- consistency parametrization (f32, VPU/EUP) ---
    t = hin[:, d_feat:d_feat + 1]                           # time column [tile_n, 1]
    tm = t - EPS
    c_skip = SD2 / (tm * tm + SD2)
    c_out = SIGMA_DATA * tm * jax.lax.rsqrt(SD2 + t * t)

    # x occupies lanes [0, d_feat) of h_in; zero the conditioning/pad lanes.
    lane = jax.lax.broadcasted_iota(jnp.int32, hin.shape, 1)
    xp = jnp.where(lane < d_feat, hin, 0.0)

    d = c_skip * xp + c_out * y
    d_ref[...] = d

    # --- per-tile column sums for the global node mean (mask padded rows) ---
    row = (jax.lax.broadcasted_iota(jnp.int32, d.shape, 0)
           + pl.program_id(0) * tile_n)
    dm = jnp.where(row < n_valid, d, 0.0)
    psum_ref[...] = jnp.sum(dm, axis=0, keepdims=True)[None, :, :]


def _center_kernel(d_ref, mean_ref, o_ref):
    """Second streaming pass: subtract the global node mean."""
    o_ref[...] = d_ref[...] - mean_ref[...]


def init_params(key, d_in, hidden, d_out):
    """Concrete conditioned model (2-layer MLP).  Weights are stored zero-padded
    to lane/MXU-aligned shapes (input -> D_PAD, hidden -> H_PAD, out -> D_PAD)
    in f32; they are cast to bf16 at the pallas_call boundary."""
    k1, k2 = jax.random.split(key)
    w1 = jax.random.normal(k1, (d_in, hidden), jnp.float32) * 0.1
    w2 = jax.random.normal(k2, (hidden, d_out), jnp.float32) * 0.1
    w1p = jnp.zeros((D_PAD, H_PAD), jnp.float32).at[:d_in, :hidden].set(w1)
    w2p = jnp.zeros((H_PAD, D_PAD), jnp.float32).at[:hidden, :d_out].set(w2)
    b1p = jnp.zeros((1, H_PAD), jnp.float32)
    b2p = jnp.zeros((1, D_PAD), jnp.float32)
    return {"W1": w1p, "b1": b1p, "W2": w2p, "b2": b2p}


def consistency_forward(x, t, par, x_batch, par_batch, params):
    """Returns (model output y, consistency output d), each [N, D]."""
    N, D = x.shape
    B = t.shape[0]
    Dp = par.shape[1]
    assert D + 1 + Dp <= D_PAD

    # --- glue (plain JAX): segment-mean pool of `par`, gather to nodes ---
    # TODO(synk): segment pooling / batch-index gathers stay in JAX (data-
    # dependent scatter/gather, not worth a hand-rolled DMA gather here).
    counts = jax.ops.segment_sum(jnp.ones((par.shape[0],), jnp.float32),
                                 par_batch, num_segments=B)
    par_pooled = jax.ops.segment_sum(par, par_batch, num_segments=B)
    par_pooled = par_pooled / jnp.maximum(counts, 1.0)[:, None]      # [B, Dp]
    t_node = t[x_batch]                                              # [N]
    par_node = par_pooled[x_batch]                                   # [N, Dp]

    # Single packed, lane-padded input: [ x | t | par | 0...0 ] -> [N_pad, 128]
    feat = jnp.concatenate([x, t_node[:, None], par_node], axis=1)
    tile_n = min(MAX_TILE_N, _round_up(N, 8))
    n_pad = _round_up(N, tile_n)
    h_in = jnp.pad(feat, ((0, n_pad - N), (0, D_PAD - feat.shape[1])))
    num_tiles = n_pad // tile_n

    w1 = params["W1"].astype(jnp.bfloat16)    # [D_PAD, H_PAD]
    w2 = params["W2"].astype(jnp.bfloat16)    # [H_PAD, D_PAD]
    b1 = params["b1"]                         # [1, H_PAD] f32
    b2 = params["b2"]                         # [1, D_PAD] f32

    cparams = pltpu.CompilerParams(
        dimension_semantics=("parallel",),
        vmem_limit_bytes=32 * 1024 * 1024,
    )

    node_spec = pl.BlockSpec((tile_n, D_PAD), lambda i: (i, 0))

    def const_spec(shape):
        return pl.BlockSpec(shape, lambda i: (0, 0))   # resident across tiles

    y_full, d_full, psum = pl.pallas_call(
        functools.partial(_fwd_kernel, N, D, tile_n),
        grid=(num_tiles,),
        in_specs=[
            node_spec,                       # packed input h_in
            const_spec((D_PAD, H_PAD)),      # W1
            const_spec((1, H_PAD)),          # b1
            const_spec((H_PAD, D_PAD)),      # W2
            const_spec((1, D_PAD)),          # b2
        ],
        out_specs=(
            node_spec,                                        # y
            node_spec,                                        # d (un-centered)
            pl.BlockSpec((1, 1, D_PAD), lambda i: (i, 0, 0)),  # per-tile col sums
        ),
        out_shape=(
            jax.ShapeDtypeStruct((n_pad, D_PAD), jnp.float32),
            jax.ShapeDtypeStruct((n_pad, D_PAD), jnp.float32),
            jax.ShapeDtypeStruct((num_tiles, 1, D_PAD), jnp.float32),
        ),
        compiler_params=cparams,
    )(h_in, w1, b1, w2, b2)

    # Tiny cross-tile reduction -> global node mean (true N, padded rows masked).
    mean = (jnp.sum(psum[:, 0, :], axis=0) / N)[None, :]             # [1, D_PAD]

    d_centered = pl.pallas_call(
        _center_kernel,
        grid=(num_tiles,),
        in_specs=[node_spec, const_spec((1, D_PAD))],
        out_specs=node_spec,
        out_shape=jax.ShapeDtypeStruct((n_pad, D_PAD), jnp.float32),
        compiler_params=cparams,
    )(d_full, mean)

    return y_full[:N, :D], d_centered[:N, :D]


def _reference(x, t, par, x_batch, par_batch, params):
    """Pure-JAX f32 reference for correctness checking."""
    N, D = x.shape
    B = t.shape[0]
    counts = jax.ops.segment_sum(jnp.ones((par.shape[0],), jnp.float32),
                                 par_batch, num_segments=B)
    par_pooled = jax.ops.segment_sum(par, par_batch, num_segments=B)
    par_pooled = par_pooled / jnp.maximum(counts, 1.0)[:, None]
    t_node = t[x_batch][:, None]
    feat = jnp.concatenate([x, t_node, par_pooled[x_batch]], axis=1)
    h_in = jnp.pad(feat, ((0, 0), (0, D_PAD - feat.shape[1])))
    y = jnp.maximum(h_in @ params["W1"] + params["b1"], 0.0) @ params["W2"] + params["b2"]
    y = y[:, :D]
    tm = t[:, None] - EPS
    c_skip = SD2 / (tm ** 2 + SD2)
    c_out = SIGMA_DATA * tm / jnp.sqrt(SD2 + t[:, None] ** 2)
    d = c_skip[x_batch] * x + c_out[x_batch] * y
    d = d - d.mean(axis=0, keepdims=True)
    return y, d


if __name__ == "__main__":
    key = jax.random.PRNGKey(0)
    k_x, k_t, k_par, k_w = jax.random.split(key, 4)

    B = 2          # graphs
    N = 16         # total nodes
    D = 8          # node feature dim
    P = 6          # parameter rows
    Dp = 4         # parameter feature dim
    H = 32         # logical hidden dim (zero-padded to H_PAD=128 in the kernel)

    x = jax.random.normal(k_x, (N, D), jnp.float32)
    t = jax.random.uniform(k_t, (B,), jnp.float32, minval=0.1, maxval=1.0)
    par = jax.random.normal(k_par, (P, Dp), jnp.float32)
    x_batch = jnp.array([0] * (N // 2) + [1] * (N // 2), jnp.int32)
    par_batch = jnp.array([0, 0, 0, 1, 1, 1], jnp.int32)

    params = init_params(k_w, D + 1 + Dp, H, D)

    y, d = consistency_forward(x, t, par, x_batch, par_batch, params)
    jax.block_until_ready((y, d))

    y_ref, d_ref = _reference(x, t, par, x_batch, par_batch, params)
    # bf16 MXU operands (f32 accumulate) -> loosened tolerance vs f32 reference.
    assert jnp.allclose(y, y_ref, atol=2e-2, rtol=2e-2), \
        float(jnp.max(jnp.abs(y - y_ref)))
    assert jnp.allclose(d, d_ref, atol=2e-2, rtol=2e-2), \
        float(jnp.max(jnp.abs(d - d_ref)))

    print("KERNEL_OK")
</pallas_src>

<mosaic_0001>
module attributes {stable_mosaic.version = 11 : i64} {
  func.func @_fwd_kernel(%arg0: i32, %arg1: memref<16x128xf32, #tpu.memory_space<vmem>>, %arg2: memref<128x128xbf16, #tpu.memory_space<vmem>>, %arg3: memref<1x128xf32, #tpu.memory_space<vmem>>, %arg4: memref<128x128xbf16, #tpu.memory_space<vmem>>, %arg5: memref<1x128xf32, #tpu.memory_space<vmem>>, %arg6: memref<16x128xf32, #tpu.memory_space<vmem>>, %arg7: memref<16x128xf32, #tpu.memory_space<vmem>>, %arg8: memref<1x1x128xf32, #tpu.memory_space<vmem>>) attributes {dimension_semantics = [#tpu.dimension_semantics<parallel>], iteration_bounds = array<i64: 1>, scalar_prefetch = 0 : i64, scratch_operands = 0 : i64, tpu.core_type = #tpu.core_type<tc>, window_params = [{transform_indices = @transform_0, window_bounds = array<i64: 16, 128>}, {pipeline_mode = #tpu.pipeline_mode<synchronous>, transform_indices = @transform_1, window_bounds = array<i64: 128, 128>}, {pipeline_mode = #tpu.pipeline_mode<synchronous>, transform_indices = @transform_2, window_bounds = array<i64: 1, 128>}, {pipeline_mode = #tpu.pipeline_mode<synchronous>, transform_indices = @transform_3, window_bounds = array<i64: 128, 128>}, {pipeline_mode = #tpu.pipeline_mode<synchronous>, transform_indices = @transform_4, window_bounds = array<i64: 1, 128>}, {transform_indices = @transform_5, window_bounds = array<i64: 16, 128>}, {transform_indices = @transform_6, window_bounds = array<i64: 16, 128>}, {transform_indices = @transform_7, window_bounds = array<i64: 1, 1, 128>}]} {
    %c0 = arith.constant 0 : index
    %c0_0 = arith.constant 0 : index
    %0 = vector.load %arg1[%c0, %c0_0] : memref<16x128xf32, #tpu.memory_space<vmem>>, vector<16x128xf32>
    %1 = arith.truncf %0 : vector<16x128xf32> to vector<16x128xbf16>
    %c0_1 = arith.constant 0 : index
    %c0_2 = arith.constant 0 : index
    %2 = vector.load %arg2[%c0_1, %c0_2] : memref<128x128xbf16, #tpu.memory_space<vmem>>, vector<128x128xbf16>
    %cst = arith.constant dense<0.000000e+00> : vector<16x128xf32>
    %3 = tpu.matmul %1, %2, %cst {dimension_numbers = #tpu.dot_dimension_numbers<[1], [0], [0], [1], [0, 0, 1, 1], [], []>} : vector<16x128xbf16>, vector<128x128xbf16>, vector<16x128xf32> -> vector<16x128xf32>
    %c0_3 = arith.constant 0 : index
    %c0_4 = arith.constant 0 : index
    %4 = vector.load %arg3[%c0_3, %c0_4] : memref<1x128xf32, #tpu.memory_space<vmem>>, vector<1x128xf32>
    %5 = vector.broadcast %4 : vector<1x128xf32> to vector<16x128xf32>
    %6 = arith.addf %3, %5 : vector<16x128xf32>
    %cst_5 = arith.constant 0.000000e+00 : f32
    %7 = vector.broadcast %cst_5 : f32 to vector<16x128xf32>
    %8 = arith.maximumf %6, %7 : vector<16x128xf32>
    %9 = arith.truncf %8 : vector<16x128xf32> to vector<16x128xbf16>
    %c0_6 = arith.constant 0 : index
    %c0_7 = arith.constant 0 : index
    %10 = vector.load %arg4[%c0_6, %c0_7] : memref<128x128xbf16, #tpu.memory_space<vmem>>, vector<128x128xbf16>
    %cst_8 = arith.constant dense<0.000000e+00> : vector<16x128xf32>
    %11 = tpu.matmul %9, %10, %cst_8 {dimension_numbers = #tpu.dot_dimension_numbers<[1], [0], [0], [1], [0, 0, 1, 1], [], []>} : vector<16x128xbf16>, vector<128x128xbf16>, vector<16x128xf32> -> vector<16x128xf32>
    %c0_9 = arith.constant 0 : index
    %c0_10 = arith.constant 0 : index
    %12 = vector.load %arg5[%c0_9, %c0_10] : memref<1x128xf32, #tpu.memory_space<vmem>>, vector<1x128xf32>
    %13 = vector.broadcast %12 : vector<1x128xf32> to vector<16x128xf32>
    %14 = arith.addf %11, %13 : vector<16x128xf32>
    %c0_11 = arith.constant 0 : index
    %c0_12 = arith.constant 0 : index
    %15 = vector.load %arg6[%c0_11, %c0_12] : memref<16x128xf32, #tpu.memory_space<vmem>>, vector<16x128xf32>
    tpu.vector_store %arg6[%c0_11, %c0_12], %14 {strides = array<i32>} : memref<16x128xf32, #tpu.memory_space<vmem>>, vector<16x128xf32>,
    %16 = vector.extract_strided_slice %0 {offsets = [0, 8], sizes = [16, 1], strides = [1, 1]} : vector<16x128xf32> to vector<16x1xf32>
    %cst_13 = arith.constant 2.000000e-03 : f32
    %17 = vector.broadcast %cst_13 : f32 to vector<16x1xf32>
    %18 = arith.subf %16, %17 : vector<16x1xf32>
    %19 = arith.mulf %18, %18 : vector<16x1xf32>
    %cst_14 = arith.constant 2.500000e-01 : f32
    %20 = vector.broadcast %cst_14 : f32 to vector<16x1xf32>
    %21 = arith.addf %19, %20 : vector<16x1xf32>
    %cst_15 = arith.constant 2.500000e-01 : f32
    %22 = vector.broadcast %cst_15 : f32 to vector<16x1xf32>
    %23 = arith.divf %22, %21 : vector<16x1xf32>
    %cst_16 = arith.constant 5.000000e-01 : f32
    %24 = vector.broadcast %cst_16 : f32 to vector<16x1xf32>
    %25 = arith.mulf %24, %18 : vector<16x1xf32>
    %26 = arith.mulf %16, %16 : vector<16x1xf32>
    %cst_17 = arith.constant 2.500000e-01 : f32
    %27 = vector.broadcast %cst_17 : f32 to vector<16x1xf32>
    %28 = arith.addf %27, %26 : vector<16x1xf32>
    %29 = math.rsqrt %28 : vector<16x1xf32>
    %30 = arith.mulf %25, %29 : vector<16x1xf32>
    %31 = tpu.iota {dimensions = array<i32: 1>} : vector<16x128xi32>
    %c8_i32 = arith.constant 8 : i32
    %32 = vector.broadcast %c8_i32 : i32 to vector<16x128xi32>
    %33 = arith.cmpi slt, %31, %32 : vector<16x128xi32>
    %cst_18 = arith.constant 0.000000e+00 : f32
    %34 = vector.broadcast %cst_18 : f32 to vector<16x128xf32>
    %35 = arith.select %33, %0, %34 : vector<16x128xi1>, vector<16x128xf32>
    %36 = vector.broadcast %23 : vector<16x1xf32> to vector<16x128xf32>
    %37 = arith.mulf %36, %35 : vector<16x128xf32>
    %38 = vector.broadcast %30 : vector<16x1xf32> to vector<16x128xf32>
    %39 = arith.mulf %38, %14 : vector<16x128xf32>
    %40 = arith.addf %37, %39 : vector<16x128xf32>
    %c0_19 = arith.constant 0 : index
    %c0_20 = arith.constant 0 : index
    %41 = vector.load %arg7[%c0_19, %c0_20] : memref<16x128xf32, #tpu.memory_space<vmem>>, vector<16x128xf32>
    tpu.vector_store %arg7[%c0_19, %c0_20], %40 {strides = array<i32>} : memref<16x128xf32, #tpu.memory_space<vmem>>, vector<16x128xf32>,
    %42 = tpu.iota {dimensions = array<i32: 0>} : vector<16x128xi32>
    %c16_i32 = arith.constant 16 : i32
    %43 = arith.muli %arg0, %c16_i32 : i32
    %44 = vector.broadcast %43 : i32 to vector<16x128xi32>
    %45 = arith.addi %42, %44 : vector<16x128xi32>
    %c16_i32_21 = arith.constant 16 : i32
    %46 = vector.broadcast %c16_i32_21 : i32 to vector<16x128xi32>
    %47 = arith.cmpi slt, %45, %46 : vector<16x128xi32>
    %cst_22 = arith.constant 0.000000e+00 : f32
    %48 = vector.broadcast %cst_22 : f32 to vector<16x128xf32>
    %49 = arith.select %47, %40, %48 : vector<16x128xi1>, vector<16x128xf32>
    %cst_23 = arith.constant dense<0.000000e+00> : vector<128xf32>
    %50 = vector.multi_reduction <add>, %49, %cst_23 [0] : vector<16x128xf32> to vector<128xf32>
    %51 = vector.shape_cast %50 : vector<128xf32> to vector<1x128xf32>
    %52 = vector.shape_cast %51 : vector<1x128xf32> to vector<1x1x128xf32>
    %c0_24 = arith.constant 0 : index
    %c0_25 = arith.constant 0 : index
    %c0_26 = arith.constant 0 : index
    %53 = vector.load %arg8[%c0_24, %c0_25, %c0_26] : memref<1x1x128xf32, #tpu.memory_space<vmem>>, vector<1x1x128xf32>
    tpu.vector_store %arg8[%c0_24, %c0_25, %c0_26], %52 {strides = array<i32>} : memref<1x1x128xf32, #tpu.memory_space<vmem>>, vector<1x1x128xf32>,
    return
  }
  func.func @transform_0(%arg0: i32) -> (i32, i32) {
    %c0_i32 = arith.constant 0 : i32
    %c0_i32_0 = arith.constant 0 : i32
    return %arg0, %c0_i32 : i32, i32
  }
  func.func @transform_1(%arg0: i32) -> (i32, i32) {
    %c0_i32 = arith.constant 0 : i32
    %c0_i32_0 = arith.constant 0 : i32
    %c0_i32_1 = arith.constant 0 : i32
    return %c0_i32, %c0_i32_0 : i32, i32
  }
  func.func @transform_2(%arg0: i32) -> (i32, i32) {
    %c0_i32 = arith.constant 0 : i32
    %c0_i32_0 = arith.constant 0 : i32
    %c0_i32_1 = arith.constant 0 : i32
    return %c0_i32, %c0_i32_0 : i32, i32
  }
  func.func @transform_3(%arg0: i32) -> (i32, i32) {
    %c0_i32 = arith.constant 0 : i32
    %c0_i32_0 = arith.constant 0 : i32
    %c0_i32_1 = arith.constant 0 : i32
    return %c0_i32, %c0_i32_0 : i32, i32
  }
  func.func @transform_4(%arg0: i32) -> (i32, i32) {
    %c0_i32 = arith.constant 0 : i32
    %c0_i32_0 = arith.constant 0 : i32
    %c0_i32_1 = arith.constant 0 : i32
    return %c0_i32, %c0_i32_0 : i32, i32
  }
  func.func @transform_5(%arg0: i32) -> (i32, i32) {
    %c0_i32 = arith.constant 0 : i32
    %c0_i32_0 = arith.constant 0 : i32
    return %arg0, %c0_i32 : i32, i32
  }
  func.func @transform_6(%arg0: i32) -> (i32, i32) {
    %c0_i32 = arith.constant 0 : i32
    %c0_i32_0 = arith.constant 0 : i32
    return %arg0, %c0_i32 : i32, i32
  }
  func.func @transform_7(%arg0: i32) -> (i32, i32, i32) {
    %c0_i32 = arith.constant 0 : i32
    %c0_i32_0 = arith.constant 0 : i32
    %c0_i32_1 = arith.constant 0 : i32
    return %arg0, %c0_i32, %c0_i32_0 : i32, i32, i32
  }
}

</mosaic_0001>

<bundles_post_ra>
// kernel: tpu_custom_call.1
= control target key start
LH: loop header
LB: loop body
LE: loop exit
PB: predicated region body
PF: predicated region fallthrough
CT: control target
= control target key end

     0   :  { %13 = vsyncpa [#allocation3], 0  ;;  %s756_s0 = inlined_call_operand.hbm [shape: f32[16,128], index: 0, kind: input, shape index: {}]   ;;  %s757_s1 = inlined_call_operand.hbm [shape: bf16[128,128], index: 1, kind: input, shape index: {}]   ;;  %s758_s2 = inlined_call_operand.vmem [shape: f32[1,128], index: 2, kind: input, shape index: {}]   ;;  %s759_s3 = inlined_call_operand.hbm [shape: bf16[128,128], index: 3, kind: input, shape index: {}]   ;;  %s760_s4 = inlined_call_operand.vmem [shape: f32[1,128], index: 4, kind: input, shape index: {}]   ;;  %s761_s5 = inlined_call_operand.hbm [shape: f32[16,128], index: 5, kind: output, shape index: {0}]   ;;  %s762_s6 = inlined_call_operand.hbm [shape: f32[16,128], index: 6, kind: output, shape index: {1}]   ;;  %s763_s7 = inlined_call_operand.hbm [shape: f32[1,1,128], index: 7, kind: output, shape index: {2}]  }
   0x1   :  { %14 = vsyncpa [#allocation6], 0 }
   0x2   :  { %15 = vsyncpa [#allocation4], 0 }
   0x3   :  { %16 = vsyncpa [#allocation10], 0  ;;  %s663_s24 = smov [#allocation5]  }
   0x4   :  { %s34_s25 = sshll.u32 %s663_s24, 4  ;;  %s35_s25 = int_to_ptr.vmem [resolvable:$true] %s34_s25 }
   0x5   :  { %s543_s26 = scalar_lea.vmem %s35_s25, 1024  ;;  %p548_p1 = scmp.lt.s32.totalorder %s35_s25, %s35_s25 }
   0x6   :  { %p544_p0 = scmp.ne.s32.totalorder %s35_s25, %s543_s26  ;;  %p549_p2 = scmp.lt.s32.totalorder %s543_s26, %s543_s26 }
   0x8   :  { %p550_p3 = por %p549_p2, %p548_p1 }
   0xa   :  { %p551_p4 = pnand %p550_p3, %p544_p0 }
   0xc   :  { %554 = shalt.err (!%p551_p4)
}
   0xd   :  { %s664_s27 = smov 64   ;;  %s665_s28 = smov 4  }
   0xe   :  { %40 = dma.hbm_to_vmem [thread:$0]  %s757_s1, 1024, %s35_s25, [#allocation6], %s664_s27, %s664_s27, %s665_s28  }
   0xf   :  { %s666_s8 = smov [#allocation2]  }
  0x10   :  { %s22_s9 = sshll.u32 %s666_s8, 4  ;;  %s23_s9 = int_to_ptr.vmem [resolvable:$true] %s22_s9 }
  0x11   :  { %s563_s10 = scalar_lea.vmem %s23_s9, 256  ;;  %p568_p6 = scmp.lt.s32.totalorder %s23_s9, %s23_s9 }
  0x12   :  { %p564_p5 = scmp.ne.s32.totalorder %s23_s9, %s563_s10  ;;  %p569_p7 = scmp.lt.s32.totalorder %s563_s10, %s563_s10 }
  0x14   :  { %p570_p8 = por %p569_p7, %p568_p6 }
  0x16   :  { %p571_p9 = pnand %p570_p8, %p564_p5 }
  0x18   :  { %574 = shalt.err (!%p571_p9)
}
  0x19   :  { %s667_s11 = smov 128   ;;  %s668_s12 = smov 8  }
  0x1a   :  { %28 = dma.hbm_to_vmem [thread:$0]  %s756_s0, 256, %s23_s9, [#allocation3], %s667_s11, %s667_s11, %s668_s12  }
  0x1b   :  { %s669_s1 = smov [#allocation7]  }
  0x1c   :  { %s48_s15 = sshll.u32 %s669_s1, 4  ;;  %s49_s15 = int_to_ptr.vmem [resolvable:$true] %s48_s15 }
  0x1d   :  { %s583_s16 = scalar_lea.vmem %s49_s15, 1024  ;;  %p588_p11 = scmp.lt.s32.totalorder %s49_s15, %s49_s15 }
  0x1e   :  { %p584_p10 = scmp.ne.s32.totalorder %s49_s15, %s583_s16  ;;  %p589_p12 = scmp.lt.s32.totalorder %s583_s16, %s583_s16 }
  0x20   :  { %p590_p13 = por %p589_p12, %p588_p11 }
  0x22   :  { %p591_p0 = pnand %p590_p13, %p584_p10 }
  0x24   :  { %594 = shalt.err (!%p591_p0)
}
  0x25   :  { %54 = dma.hbm_to_vmem [thread:$0]  %s759_s3, 1024, %s49_s15, [#allocation6], %s664_s27, %s664_s27, %s665_s28  }
  0x26   :  { %655 = dma.done.wait [#allocation3], 256  }
  0x27   :  { %656 = vsyncadd [#allocation3], 4294967040 }
  0x28   :  { %657 = dma.done.wait [#allocation6], 2048  }
  0x29   :  { %658 = vsyncadd [#allocation6], 4294965248  ;;  %v670_v0 = vmov 0.0   ;;  %vm671_vm0 = vmmov 0   ;;  %v511_v1 = vld [vmem:[#allocation5 + $0x38] sm:$0xff]   ;;  %v512_v2 = vld [vmem:[#allocation5 + $0x30] sm:$0xff]   ;;  %v319_v51 = vlaneseq }
  0x2a   :  { %456 = vmatprep.subr.bf16.mxu0 %v670_v0  ;;  %472 = vmatprep.mubr.msk.bf16.mxu0 %vm671_vm0, %v670_v0  ;;  %v513_v3 = vld [vmem:[#allocation5 + $0x28] sm:$0xff]   ;;  %v519_v4 = vld [vmem:[#allocation7 + $0x38] sm:$0xff]   ;;  %v514_v5 = vld [vmem:[#allocation5 + $0x20] sm:$0xff]   ;;  %v672_v27 = vmov 8   ;;  %s674_s22 = smov [#allocation9]  }
  0x2b   :  { %476 = vmatprep.subr.bf16.mxu1 %v670_v0  ;;  %492 = vmatprep.mubr.msk.bf16.mxu1 %vm671_vm0, %v670_v0  ;;  %v520_v6 = vld [vmem:[#allocation7 + $0x30] sm:$0xff]   ;;  %v515_v7 = vld [vmem:[#allocation5 + $0x18] sm:$0xff]   ;;  %v521_v8 = vld [vmem:[#allocation7 + $0x28] sm:$0xff]   ;;  %v320_v52 = vand.u32 127, %v319_v51 }
  0x2c   :  { %457 = vmatpush3.bf16.msra.mxu0 %v511_v1  ;;  %477 = vmatpush3.bf16.msra.mxu1 %v519_v4  ;;  %v516_v9 = vld [vmem:[#allocation5 + $0x10] sm:$0xff]   ;;  %v522_v10 = vld [vmem:[#allocation7 + $0x20] sm:$0xff]   ;;  %v517_v11 = vld [vmem:[#allocation5 + $0x8] sm:$0xff]  }
  0x2d   :  { %458 = vmatprep.subr.bf16.mxu0 %v670_v0  ;;  %478 = vmatprep.subr.bf16.mxu1 %v670_v0  ;;  %v523_v12 = vld [vmem:[#allocation7 + $0x18] sm:$0xff]   ;;  %v518_v13 = vld [vmem:[#allocation5] sm:$0xff]   ;;  %v67_v14 = vld [vmem:[#allocation2] sm:$0xff]  ;;  %vm321_vm1 = vcmp.lt.s32.totalorder %v320_v52, 8 }
  0x2e   :  { %v728_v15 = vld [vmem:[#allocation2 + $0x8] sm:$0xff]  ;;  %v311_v17 = vmul.f32 %v67_v14, %v67_v14  ;;  %v524_v21 = vld [vmem:[#allocation7 + $0x10] sm:$0xff]   ;;  %v525_v22 = vld [vmem:[#allocation7 + $0x8] sm:$0xff]   ;;  %v436_v24 = vadd.f32 -0.002, %v67_v14  ;;  %510 = vset.pattern.permute.xlu1 %v672_v27  ;;  %509 = vset.pattern.permute.xlu0 %v672_v27  ;;  %v322_v53 = vsel %vm321_vm1, %v67_v14, 0.0 }
  0x2f   :  { %v69_v16 = vpack.c.bf16 %v728_v15, %v67_v14  ;;  %v312_v18 = vmul.f32 %v728_v15, %v728_v15  ;;  %v526_v23 = vld [vmem:[#allocation7] sm:$0xff]   ;;  %v437_v25 = vadd.f32 -0.002, %v728_v15  ;;  %v418_v41 = vld [vmem:[%s758_s2] ss:$0 sm:$0xff]  ;;  %s673_s2 = smov [#allocation8]  }
  0x30   :  { %459 = vmatpush3.bf16.msra.mxu0 %v512_v2  ;;  %479 = vmatpush3.bf16.msra.mxu1 %v520_v6  ;;  %v313_v19 = vadd.f32 0.25, %v311_v17  ;;  %v309_v28 = vmul.f32 0.5, %v436_v24  ;;  %v301_v29 = vmul.f32 %v436_v24, %v436_v24  ;;  %v427_v55 = vld [vmem:[%s760_s4] ss:$0 sm:$0xff]  ;;  %s376_s21 = sshll.u32 %s673_s2, 4  ;;  %v323_v62 = vsel %vm321_vm1, %v728_v15, 0.0  ;;  %s377_s21 = int_to_ptr.vmem [resolvable:$true] %s376_s21 }
  0x31   :  { %460 = vmatprep.subr.bf16.mxu0 %v670_v0  ;;  %480 = vmatprep.subr.bf16.mxu1 %v670_v0  ;;  %v314_v20 = vadd.f32 0.25, %v312_v18  ;;  %v310_v30 = vmul.f32 0.5, %v437_v25  ;;  %v302_v31 = vmul.f32 %v437_v25, %v437_v25  ;;  %s388_s4 = sshll.u32 %s674_s22, 4  ;;  %s595_s23 = scalar_lea.vmem %s377_s21, 256  ;;  %s389_s4 = int_to_ptr.vmem [resolvable:$true] %s388_s4 }
  0x32   :  { %527 = vrsqrt.f32 %v313_v19  ;;  %v303_v34 = vadd.f32 0.25, %v301_v29  ;;  %p596_p1 = scmp.ne.s32.totalorder %s377_s21, %s595_s23  ;;  %p600_p2 = scmp.lt.s32.totalorder %s377_s21, %s377_s21 }
  0x33   :  { %529 = vrsqrt.f32 %v314_v20  ;;  %v304_v35 = vadd.f32 0.25, %v302_v31  ;;  %p601_p3 = scmp.lt.s32.totalorder %s595_s23, %s595_s23 }
  0x34   :  { %461 = vmatpush3.bf16.msra.mxu0 %v513_v3  ;;  %481 = vmatpush3.bf16.msra.mxu1 %v521_v8  ;;  %531 = vrcp.f32 %v303_v34 }
  0x35   :  { %462 = vmatprep.subr.bf16.mxu0 %v670_v0  ;;  %482 = vmatprep.subr.bf16.mxu1 %v670_v0  ;;  %533 = vrcp.f32 %v304_v35  ;;  %p602_p4 = por %p601_p3, %p600_p2 }
  0x37   :  { %p603_p5 = pnand %p602_p4, %p596_p1 }
  0x38   :  { %463 = vmatpush3.bf16.msra.mxu0 %v514_v5  ;;  %483 = vmatpush3.bf16.msra.mxu1 %v522_v10 }
  0x39   :  { %464 = vmatprep.subr.bf16.mxu0 %v670_v0  ;;  %484 = vmatprep.subr.bf16.mxu1 %v670_v0 }
  0x3c   :  { %465 = vmatpush3.bf16.msra.mxu0 %v515_v7  ;;  %485 = vmatpush3.bf16.msra.mxu1 %v523_v12 }
  0x3d   :  { %466 = vmatprep.subr.bf16.mxu0 %v670_v0  ;;  %486 = vmatprep.subr.bf16.mxu1 %v670_v0 }
  0x3f   :  { %v528_v26 = vpop.eup %527 }
  0x40   :  { %467 = vmatpush3.bf16.msra.mxu0 %v516_v9  ;;  %487 = vmatpush3.bf16.msra.mxu1 %v524_v21  ;;  %v530_v32 = vpop.eup %529  ;;  %v317_v33 = vmul.f32 %v528_v26, %v309_v28 }
  0x41   :  { %468 = vmatprep.subr.bf16.mxu0 %v670_v0  ;;  %488 = vmatprep.subr.bf16.mxu1 %v670_v0  ;;  %v318_v36 = vmul.f32 %v530_v32, %v310_v30  ;;  %v532_v37 = vpop.eup %531 }
  0x42   :  { %338 = vperm.xlu1 %510, %v317_v33   ;;  %v534_v38 = vpop.eup %533  ;;  %v306_v39 = vmul.f32 0.25, %v532_v37 }
  0x43   :  { %v308_v40 = vmul.f32 0.25, %v534_v38 }
  0x44   :  { %469 = vmatpush3.bf16.msra.mxu0 %v517_v11  ;;  %489 = vmatpush3.bf16.msra.mxu1 %v525_v22 }
  0x45   :  { %470 = vmatprep.subr.bf16.mxu0 %v670_v0  ;;  %490 = vmatprep.subr.bf16.mxu1 %v670_v0 }
  0x46   :  { %343 = vperm.xlu1 %510, %v318_v36   ;;  %326 = vperm.xlu0 %509, %v306_v39  }
  0x48   :  { %471 = vmatpush3.bf16.msra.mxu0 %v518_v13  ;;  %491 = vmatpush3.bf16.msra.mxu1 %v526_v23 }
  0x4a   :  { %331 = vperm.xlu0 %509, %v308_v40  }
  0x4b   :  { %473 = vmatmul.mubr.bf16.vlgmr.msra.gmra.mxu0 %v69_v16 }
  0xbd   :  { %v339_v56 = vpop.permute.xlu1 %338 }
  0xc1   :  { %v327_v54 = vpop.permute.xlu0 %326  ;;  %v344_v3 = vpop.permute.xlu1 %343 }
  0xc2   :  { %v334_v58 = vmul.f32 %v327_v54, %v322_v53 }
  0xc5   :  { %v332_v63 = vpop.permute.xlu0 %331 }
  0xc6   :  { %v335_v5 = vmul.f32 %v332_v63, %v323_v62 }
 0x10b   :  { %v175_v42 = vpop.f32.mrf.mxu0 }
 0x10c   :  { %v176_v44 = vadd.f32 %v418_v41, %v175_v42 }
 0x10d   :  { %v474_v43 = vpop.f32.mrf.mxu0 }
 0x10e   :  { %v182_v48 = vmax.f32 %v176_v44, 0.0 }
 0x10f   :  { %v178_v45 = vpop.f32.mrf.mxu0 }
 0x110   :  { %v179_v46 = vadd.f32 %v418_v41, %v178_v45 }
 0x111   :  { %v475_v47 = vpop.f32.mrf.mxu0 }
 0x112   :  { %v183_v49 = vmax.f32 %v179_v46, 0.0 }
 0x114   :  { %v184_v50 = vpack.c.bf16 %v183_v49, %v182_v48 }
 0x116   :  { %493 = vmatmul.mubr.bf16.vlgmr.msra.gmra.mxu1 %v184_v50 }
 0x1d6   :  { %v290_v57 = vpop.f32.mrf.mxu1 }
 0x1d7   :  { %v291_v59 = vadd.f32 %v427_v55, %v290_v57 }
 0x1d8   :  { %v494_v60 = vpop.f32.mrf.mxu1 }
 0x1d9   :  { %297 = vst [vmem:[#allocation8] sm:$0xff] %v291_v59  ;;  %v346_v61 = vmul.f32 %v339_v56, %v291_v59 }
 0x1da   :  { %v293_v0 = vpop.f32.mrf.mxu1 }
 0x1db   :  { %v348_v1 = vadd.f32 %v346_v61, %v334_v58  ;;  %v294_v2 = vadd.f32 %v427_v55, %v293_v0 }
 0x1dc   :  { %v495_v4 = vpop.f32.mrf.mxu1 }
 0x1dd   :  { %350 = vst [vmem:[#allocation9] sm:$0xff] %v348_v1  ;;  %298 = vst [vmem:[#allocation8 + $0x8] sm:$0xff] %v294_v2  ;;  %v347_v6 = vmul.f32 %v344_v3, %v294_v2 }
 0x1de   :  { %606 = shalt.err (!%p603_p5)
}
 0x1df   :  { %382 = dma.vmem_to_hbm [thread:$0]  %s377_s21, 256, %s761_s5, [#allocation4], %s667_s11, %s667_s11, %s668_s12   ;;  %v349_v7 = vadd.f32 %v347_v6, %v335_v5 }
 0x1e0   :  { %s615_s26 = scalar_lea.vmem %s389_s4, 256  ;;  %p620_p7 = scmp.lt.s32.totalorder %s389_s4, %s389_s4 }
 0x1e1   :  { %v363_v8 = vadd.f32 %v349_v7, %v348_v1  ;;  %351 = vst [vmem:[#allocation9 + $0x8] sm:$0xff] %v349_v7  ;;  %p616_p6 = scmp.ne.s32.totalorder %s389_s4, %s615_s26  ;;  %p621_p8 = scmp.lt.s32.totalorder %s615_s26, %s615_s26 }
 0x1e3   :  { %p622_p9 = por %p621_p8, %p620_p7 }
 0x1e5   :  { %p623_p10 = pnand %p622_p9, %p616_p6 }
 0x1e7   :  { %626 = shalt.err (!%p623_p10)
}
 0x1e8   :  { %394 = dma.vmem_to_hbm [thread:$0]  %s389_s4, 256, %s762_s6, [#allocation10], %s667_s11, %s667_s11, %s668_s12   ;;  %v364_v9 = vrot.slane %v363_v8, 4 }
 0x1e9   :  { %s675_s5 = smov [#allocation11]  }
 0x1ea   :  { %v365_v10 = vadd.f32 %v364_v9, %v363_v8  ;;  %s401_s29 = sshll.u32 %s675_s5, 4  ;;  %s402_s29 = int_to_ptr.vmem [resolvable:$true] %s401_s29 }
 0x1eb   :  { %s635_s30 = scalar_lea.vmem %s402_s29, 16  ;;  %s639_s8 = scalar_lea.vmem %s402_s29, 32 }
 0x1ec   :  { %v366_v11 = vrot.slane %v365_v10, 2  ;;  %p636_p11 = scmp.ne.s32.totalorder %s402_s29, %s635_s30  ;;  %p640_p12 = scmp.lt.s32.totalorder %s402_s29, %s402_s29 }
 0x1ed   :  { %p641_p13 = scmp.lt.s32.totalorder %s639_s8, %s635_s30 }
 0x1ee   :  { %v367_v12 = vadd.f32 %v366_v11, %v365_v10 }
 0x1ef   :  { %p642_p0 = por %p641_p13, %p640_p12 }
 0x1f0   :  { %v368_v13 = vrot.slane %v367_v12, 1 }
 0x1f1   :  { %p643_p1 = pnand %p642_p0, %p636_p11 }
 0x1f2   :  { %v369_v14 = vadd.f32 %v368_v13, %v367_v12 }
 0x1f4   :  { %370 = vst [vmem:[#allocation11] sm:$0x1] %v369_v14 }
 0x1f5   :  { %646 = shalt.err (!%p643_p1)
}
 0x1f6   :  { %404 = dma.vmem_to_hbm [thread:$0]  %s402_s29, 16, %s763_s7, [#allocation10]  }
 0x1f7   :  { %659 = dma.done.wait [#allocation4], 256  }
 0x1f8   :  { %660 = vsyncadd [#allocation4], 4294967040 }
 0x1f9   :  { %661 = dma.done.wait [#allocation10], 272  }
 0x1fa   :  { %662 = vsyncadd [#allocation10], 4294967024 }
 0x1fb   :  { %414 = vsyncpa [#allocation3], 1 }
 0x1fc   :  { %415 = vsyncpa [#allocation6], 1 }
 0x1fd   :  { %416 = vsyncpa [#allocation4], 1 }
 0x1fe   :  { %417 = vsyncpa [#allocation10], 1 }

</bundles_post_ra>
